<compile_context>
chip_gen: v5e
topology: v5e:2x2
jax: 0.10.0
libtpu: 0.0.40
codegen_flags: <defaults>
</compile_context>

<pallas_src>
import jax
import jax.numpy as jnp
from jax.experimental import pallas as pl
from jax.experimental.pallas import tpu as pltpu

# Plain Python float so it is baked into the kernel trace as an immediate,
# NOT captured as a closure constant (which Pallas rejects).
_NEG_LARGE = -1e30


# ------------------------------ Pallas kernel -------------------------------

def _seq_to_seq_atten_kernel(c_ref, q_ref, mask_ref, o_ref):
    """Fused masked attention for a block of `bb` batches.

    c_ref:    (bb, Lc, H)  bf16   content, batch-major
    q_ref:    (bb, Lq, H)  bf16   question, batch-major
    mask_ref: (bb, Lq)     f32    1 = valid key, 0 = pad
    o_ref:    (bb, Lc, H)  f32    attended content
    """
    c = c_ref[...]                                           # (bb, Lc, H) bf16
    q = q_ref[...]                                           # (bb, Lq, H) bf16

    # scores[b, i, j] = <C[b, i, :], Q[b, j, :]>   (MXU, f32 accumulation)
    scores = jnp.einsum("bqd,bkd->bqk", c, q,
                        preferred_element_type=jnp.float32)  # (bb, Lc, Lq)

    key_valid = mask_ref[...][:, None, :] > 0.5              # (bb, 1, Lq)
    scores = jnp.where(key_valid, scores, _NEG_LARGE)

    # numerically stable softmax over the key axis
    m = jnp.max(scores, axis=-1, keepdims=True)
    p = jnp.exp(scores - m)
    denom = jnp.sum(p, axis=-1, keepdims=True)
    attn = p * pl.reciprocal(denom, approx=True)             # EUP reciprocal

    out = jnp.einsum("bqk,bkd->bqd", attn.astype(q.dtype), q,
                     preferred_element_type=jnp.float32)     # (bb, Lc, H)
    o_ref[...] = out.astype(o_ref.dtype)


# ------------------------------ module wrapper ------------------------------

def seq_to_seq_atten(content_vec, question_vec, question_mask, *, block_b=8):
    """SeqToSeqAtten.forward.

    content_vec:   (Lc, B, H)
    question_vec:  (Lq, B, H)
    question_mask: (B, Lq)   nonzero = valid key
    returns:       (Lc, B, H)
    """
    Lc, B, H = content_vec.shape
    Lq = question_vec.shape[0]
    out_dtype = content_vec.dtype

    # Batch-major once at entry (the PyTorch module transposes too); cast the
    # matmul operands to bf16 so the MXU runs its native path.
    c_bt = jnp.transpose(content_vec, (1, 0, 2)).astype(jnp.bfloat16)   # (B,Lc,H)
    q_bt = jnp.transpose(question_vec, (1, 0, 2)).astype(jnp.bfloat16)  # (B,Lq,H)
    mask = (question_mask != 0).astype(jnp.float32)                     # (B,Lq)

    # Batch-block size: several batches per grid step so the ~0.35 us/step
    # pipeline overhead is amortized.  (For bigger H/Lc, shrink against the
    # v7x 64 MiB VMEM budget.)
    bb = B if B <= block_b else block_b
    pad = (-B) % bb
    if pad:
        c_bt = jnp.pad(c_bt, ((0, pad), (0, 0), (0, 0)))
        q_bt = jnp.pad(q_bt, ((0, pad), (0, 0), (0, 0)))
        mask = jnp.pad(mask, ((0, pad), (0, 0)))    # padded rows: all-masked
    Bp = B + pad

    out_bt = pl.pallas_call(
        _seq_to_seq_atten_kernel,
        out_shape=jax.ShapeDtypeStruct((Bp, Lc, H), out_dtype),
        grid=(Bp // bb,),
        in_specs=[
            pl.BlockSpec((bb, Lc, H), lambda b: (b, 0, 0)),
            pl.BlockSpec((bb, Lq, H), lambda b: (b, 0, 0)),
            pl.BlockSpec((bb, Lq), lambda b: (b, 0)),   # per-block mask rows
        ],
        out_specs=pl.BlockSpec((bb, Lc, H), lambda b: (b, 0, 0)),
        compiler_params=pltpu.CompilerParams(
            dimension_semantics=("parallel",)),         # shard across TCs (v7x)
    )(c_bt, q_bt, mask)

    if pad:
        out_bt = out_bt[:B]
    return jnp.transpose(out_bt, (1, 0, 2))              # back to (Lc, B, H)


# ------------------------------ reference (jnp) ------------------------------

def _reference(content_vec, question_vec, question_mask):
    """Pure-JAX reference following the same bf16 matmul path as the kernel."""
    c = jnp.transpose(content_vec, (1, 0, 2)).astype(jnp.bfloat16)
    q = jnp.transpose(question_vec, (1, 0, 2)).astype(jnp.bfloat16)
    s = jnp.einsum("bqd,bkd->bqk", c, q, preferred_element_type=jnp.float32)
    s = jnp.where((question_mask != 0)[:, None, :], s, _NEG_LARGE)
    p = jax.nn.softmax(s, axis=-1)
    o = jnp.einsum("bqk,bkd->bqd", p.astype(jnp.bfloat16), q,
                   preferred_element_type=jnp.float32)
    return jnp.transpose(o, (1, 0, 2)).astype(content_vec.dtype)


# ---------------------------------- main -------------------------------------

if __name__ == "__main__":
    # Small shapes; H = 128 keeps the kernel output lane-dense.
    Lc, Lq, B, H = 16, 8, 2, 128

    key = jax.random.PRNGKey(0)
    k_c, k_q = jax.random.split(key, 2)

    content_vec = jax.random.normal(k_c, (Lc, B, H), jnp.float32)
    question_vec = jax.random.normal(k_q, (Lq, B, H), jnp.float32)

    # second batch has 2 padded question positions
    question_lens = jnp.array([Lq, Lq - 2])
    question_mask = (jnp.arange(Lq)[None, :] < question_lens[:, None]).astype(
        jnp.float32)

    fwd = jax.jit(seq_to_seq_atten)
    out = jax.block_until_ready(fwd(content_vec, question_vec, question_mask))

    assert out.shape == (Lc, B, H), out.shape
    assert bool(jnp.all(jnp.isfinite(out)))

    ref = _reference(content_vec, question_vec, question_mask)
    assert jnp.allclose(out, ref, atol=2e-2, rtol=2e-2), (
        float(jnp.max(jnp.abs(out - ref))))

    print("KERNEL_OK")
</pallas_src>

<mosaic_0001>
module attributes {stable_mosaic.version = 11 : i64} {
  func.func @_seq_to_seq_atten_kernel(%arg0: i32, %arg1: memref<2x16x128xbf16, #tpu.memory_space<vmem>>, %arg2: memref<2x8x128xbf16, #tpu.memory_space<vmem>>, %arg3: memref<2x8xf32, #tpu.memory_space<vmem>>, %arg4: memref<2x16x128xf32, #tpu.memory_space<vmem>>) attributes {dimension_semantics = [#tpu.dimension_semantics<parallel>], iteration_bounds = array<i64: 1>, scalar_prefetch = 0 : i64, scratch_operands = 0 : i64, tpu.core_type = #tpu.core_type<tc>, window_params = [{transform_indices = @transform_0, window_bounds = array<i64: 2, 16, 128>}, {transform_indices = @transform_1, window_bounds = array<i64: 2, 8, 128>}, {transform_indices = @transform_2, window_bounds = array<i64: 2, 8>}, {transform_indices = @transform_3, window_bounds = array<i64: 2, 16, 128>}]} {
    %c0 = arith.constant 0 : index
    %c0_0 = arith.constant 0 : index
    %c0_1 = arith.constant 0 : index
    %0 = vector.load %arg1[%c0, %c0_0, %c0_1] : memref<2x16x128xbf16, #tpu.memory_space<vmem>>, vector<2x16x128xbf16>
    %c0_2 = arith.constant 0 : index
    %c0_3 = arith.constant 0 : index
    %c0_4 = arith.constant 0 : index
    %1 = vector.load %arg2[%c0_2, %c0_3, %c0_4] : memref<2x8x128xbf16, #tpu.memory_space<vmem>>, vector<2x8x128xbf16>
    "tpu.trace_start"() <{level = 10 : i32, message = "bqd,bkd->bqk"}> : () -> ()
    %cst = arith.constant dense<0.000000e+00> : vector<2x16x8xf32>
    %2 = tpu.matmul %0, %1, %cst {dimension_numbers = #tpu.dot_dimension_numbers<[2], [2], [1], [1], [0, 0, 0, 1, 1, 1], [0], [0]>} : vector<2x16x128xbf16>, vector<2x8x128xbf16>, vector<2x16x8xf32> -> vector<2x16x8xf32>
    "tpu.trace_stop"() : () -> ()
    %c0_5 = arith.constant 0 : index
    %c0_6 = arith.constant 0 : index
    %3 = vector.load %arg3[%c0_5, %c0_6] : memref<2x8xf32, #tpu.memory_space<vmem>>, vector<2x8xf32>
    %4 = vector.shape_cast %3 : vector<2x8xf32> to vector<2x1x8xf32>
    %cst_7 = arith.constant 5.000000e-01 : f32
    %5 = vector.broadcast %cst_7 : f32 to vector<2x1x8xf32>
    %6 = arith.cmpf ogt, %4, %5 : vector<2x1x8xf32>
    %cst_8 = arith.constant -1.000000e+30 : f32
    %7 = vector.shape_cast %6 : vector<2x1x8xi1> to vector<2x1x8xi1>
    %8 = vector.broadcast %7 : vector<2x1x8xi1> to vector<2x16x8xi1>
    %9 = vector.broadcast %cst_8 : f32 to vector<2x16x8xf32>
    %10 = arith.select %8, %2, %9 : vector<2x16x8xi1>, vector<2x16x8xf32>
    %cst_9 = arith.constant dense<0xFF800000> : vector<2x16xf32>
    %11 = vector.multi_reduction <maximumf>, %10, %cst_9 [2] : vector<2x16x8xf32> to vector<2x16xf32>
    %12 = vector.shape_cast %11 : vector<2x16xf32> to vector<2x16x1xf32>
    %13 = vector.broadcast %12 : vector<2x16x1xf32> to vector<2x16x8xf32>
    %14 = arith.subf %10, %13 : vector<2x16x8xf32>
    %15 = math.exp %14 : vector<2x16x8xf32>
    %cst_10 = arith.constant dense<0.000000e+00> : vector<2x16xf32>
    %16 = vector.multi_reduction <add>, %15, %cst_10 [2] : vector<2x16x8xf32> to vector<2x16xf32>
    %17 = vector.shape_cast %16 : vector<2x16xf32> to vector<2x16x1xf32>
    %18 = tpu.reciprocal %17 {approx = true} : vector<2x16x1xf32> -> vector<2x16x1xf32>
    %19 = vector.broadcast %18 : vector<2x16x1xf32> to vector<2x16x8xf32>
    %20 = arith.mulf %15, %19 : vector<2x16x8xf32>
    %21 = arith.truncf %20 : vector<2x16x8xf32> to vector<2x16x8xbf16>
    "tpu.trace_start"() <{level = 10 : i32, message = "bqk,bkd->bqd"}> : () -> ()
    %cst_11 = arith.constant dense<0.000000e+00> : vector<2x16x128xf32>
    %22 = tpu.matmul %21, %1, %cst_11 {dimension_numbers = #tpu.dot_dimension_numbers<[2], [1], [1], [2], [0, 0, 0, 1, 1, 2], [0], [0]>} : vector<2x16x8xbf16>, vector<2x8x128xbf16>, vector<2x16x128xf32> -> vector<2x16x128xf32>
    "tpu.trace_stop"() : () -> ()
    %c0_12 = arith.constant 0 : index
    %c0_13 = arith.constant 0 : index
    %c0_14 = arith.constant 0 : index
    %23 = vector.load %arg4[%c0_12, %c0_13, %c0_14] : memref<2x16x128xf32, #tpu.memory_space<vmem>>, vector<2x16x128xf32>
    tpu.vector_store %arg4[%c0_12, %c0_13, %c0_14], %22 {strides = array<i32>} : memref<2x16x128xf32, #tpu.memory_space<vmem>>, vector<2x16x128xf32>,
    return
  }
  func.func @transform_0(%arg0: i32) -> (i32, i32, i32) {
    %c0_i32 = arith.constant 0 : i32
    %c0_i32_0 = arith.constant 0 : i32
    %c0_i32_1 = arith.constant 0 : i32
    return %arg0, %c0_i32, %c0_i32_0 : i32, i32, i32
  }
  func.func @transform_1(%arg0: i32) -> (i32, i32, i32) {
    %c0_i32 = arith.constant 0 : i32
    %c0_i32_0 = arith.constant 0 : i32
    %c0_i32_1 = arith.constant 0 : i32
    return %arg0, %c0_i32, %c0_i32_0 : i32, i32, i32
  }
  func.func @transform_2(%arg0: i32) -> (i32, i32) {
    %c0_i32 = arith.constant 0 : i32
    %c0_i32_0 = arith.constant 0 : i32
    return %arg0, %c0_i32 : i32, i32
  }
  func.func @transform_3(%arg0: i32) -> (i32, i32, i32) {
    %c0_i32 = arith.constant 0 : i32
    %c0_i32_0 = arith.constant 0 : i32
    %c0_i32_1 = arith.constant 0 : i32
    return %arg0, %c0_i32, %c0_i32_0 : i32, i32, i32
  }
}

</mosaic_0001>

<bundles_post_ra>
// kernel: seq_to_seq_atten.1
= control target key start
LH: loop header
LB: loop body
LE: loop exit
PB: predicated region body
PF: predicated region fallthrough
CT: control target
= control target key end

     0   :  { %v214_v6 = vmov 0   ;;  %vm77_vm4 = vcmask 64512   ;;  %vm134_vm5 = vcmask 1043456   ;;  %s280_s1 = inlined_call_operand.vmem [shape: bf16[2,8,128], index: 1, kind: input, shape index: {}]   ;;  %s281_s0 = inlined_call_operand.vmem [shape: bf16[2,16,128], index: 0, kind: input, shape index: {}]   ;;  %s282_s2 = inlined_call_operand.vmem [shape: f32[2,8], index: 2, kind: input, shape index: {}]   ;;  %s283_s3 = inlined_call_operand.vmem [shape: f32[2,16,128], index: 3, kind: output, shape index: {}]  }
   0x1   :  { %v238_v0 = vld [vmem:[%s280_s1] sm:$0xf]  ;;  %v243_v1 = vld [vmem:[%s280_s1 + $0x4] sm:$0xf]  ;;  %v196_v3 = vld [vmem:[%s281_s0 + $0x8] sm:$0xff] }
   0x2   :  { %34 = vmatpush.bf16.xpose.msra.mxu0 %v238_v0  ;;  %54 = vmatpush.bf16.xpose.msra.mxu1 %v243_v1  ;;  %v195_v2 = vld [vmem:[%s281_s0] sm:$0xff]  ;;  %v136_v43 = vsel %vm134_vm5, %v238_v0, 0  ;;  %v161_v44 = vsel %vm134_vm5, %v243_v1, 0 }
   0x3   :  { %v61_v4 = vld [vmem:[%s282_s2] sm:$0x3]  ;;  %145 = vmatpush.bf16.msra.mxu2 %v136_v43  ;;  %170 = vmatpush.bf16.msra.mxu3 %v161_v44 }
   0x4   :  { %v63_v5 = vrot.slane %v61_v4, 1  ;;  %vm65_vm0 = vcmp.gt.f32.partialorder %v61_v4, 0.5 }
   0x5   :  { %v67_v7 = vsel %vm65_vm0, 1, %v214_v6 }
   0x6   :  { %vm66_vm1 = vcmp.gt.f32.partialorder %v63_v5, 0.5  ;;  %v69_v9 = vperm.slane %v67_v7, 0 }
   0x7   :  { %v68_v8 = vsel %vm66_vm1, 1, %v214_v6 }
   0x8   :  { %v70_v10 = vperm.slane %v68_v8, 0  ;;  %vm71_vm2 = vcmp.eq.s32.totalorder %v69_v9, 1 }
   0x9   :  { %35 = vmatmul.bf16.vlgmr.msra.gmra.mxu0 %v195_v2  ;;  %55 = vmatmul.bf16.vlgmr.msra.gmra.mxu1 %v196_v3 }
   0xa   :  { %vm72_vm3 = vcmp.eq.s32.totalorder %v70_v10, 1 }
  0x86   :  { %v36_v11 = vpop.f32.mrf.mxu0  ;;  %v56_v12 = vpop.f32.mrf.mxu1 }
  0x87   :  { %v73_v13 = vsel %vm71_vm2, %v36_v11, -1e+30  ;;  %v75_v14 = vsel %vm72_vm3, %v56_v12, -1e+30 }
  0x88   :  { %v84_v15 = vsel %vm77_vm4, %v75_v14, -inf  ;;  %v78_v16 = vsel %vm77_vm4, %v73_v13, -inf }
  0x89   :  { %85 = vmax.xlane.f32.xlu1 %v84_v15  ;;  %79 = vmax.xlane.f32.xlu0 %v78_v16 }
  0x8e   :  { %v38_v17 = vpop.f32.mrf.mxu0  ;;  %v58_v18 = vpop.f32.mrf.mxu1 }
  0x8f   :  { %v74_v19 = vsel %vm71_vm2, %v38_v17, -1e+30  ;;  %v76_v20 = vsel %vm72_vm3, %v58_v18, -1e+30 }
  0x90   :  { %v87_v21 = vsel %vm77_vm4, %v76_v20, -inf  ;;  %v81_v22 = vsel %vm77_vm4, %v74_v19, -inf }
  0x91   :  { %88 = vmax.xlane.f32.xlu1 %v87_v21  ;;  %82 = vmax.xlane.f32.xlu0 %v81_v22 }
  0xfc   :  { %v86_v23 = vpop.xlane.xlu1 %85  ;;  %v80_v24 = vpop.xlane.xlu0 %79 }
  0xfd   :  { %v92_v25 = vsub.f32 %v75_v14, %v86_v23  ;;  %v90_v26 = vsub.f32 %v73_v13, %v80_v24 }
  0xff   :  { %v98_v27 = vmul.f32 1.442695, %v92_v25  ;;  %v94_v28 = vmul.f32 1.442695, %v90_v26 }
 0x101   :  { %198 = vpow2.f32 %v98_v27 }
 0x102   :  { %200 = vpow2.f32 %v94_v28 }
 0x104   :  { %v89_v29 = vpop.xlane.xlu1 %88  ;;  %v83_v30 = vpop.xlane.xlu0 %82 }
 0x105   :  { %v93_v31 = vsub.f32 %v76_v20, %v89_v29  ;;  %v91_v32 = vsub.f32 %v74_v19, %v83_v30 }
 0x107   :  { %v199_v33 = vpop.eup %198  ;;  %v100_v34 = vmul.f32 1.442695, %v93_v31  ;;  %v96_v35 = vmul.f32 1.442695, %v91_v32 }
 0x108   :  { %v201_v36 = vpop.eup %200  ;;  %v108_v37 = vsel %vm77_vm4, %v199_v33, 0.0 }
 0x109   :  { %202 = vpow2.f32 %v100_v34  ;;  %v102_v38 = vsel %vm77_vm4, %v201_v36, 0.0  ;;  %109 = vadd.xlane.f32.xlu0 %v108_v37 }
 0x10a   :  { %204 = vpow2.f32 %v96_v35  ;;  %103 = vadd.xlane.f32.xlu2 %v102_v38 }
 0x10f   :  { %v203_v39 = vpop.eup %202 }
 0x110   :  { %v205_v40 = vpop.eup %204  ;;  %v111_v41 = vsel %vm77_vm4, %v203_v39, 0.0 }
 0x111   :  { %112 = vadd.xlane.f32.xlu1 %v111_v41  ;;  %v105_v42 = vsel %vm77_vm4, %v205_v40, 0.0 }
 0x112   :  { %106 = vadd.xlane.f32.xlu2 %v105_v42 }
 0x17c   :  { %v110_v45 = vpop.xlane.xlu0 %109 }
 0x17d   :  { %v104_v46 = vpop.xlane.xlu2 %103  ;;  %206 = vrcp.f32 %v110_v45 }
 0x17e   :  { %208 = vrcp.f32 %v104_v46 }
 0x183   :  { %v207_v48 = vpop.eup %206 }
 0x184   :  { %v113_v47 = vpop.xlane.xlu1 %112  ;;  %v209_v50 = vpop.eup %208  ;;  %v120_v51 = vmul.f32 %v207_v48, %v199_v33 }
 0x185   :  { %210 = vrcp.f32 %v113_v47  ;;  %v107_v49 = vpop.xlane.xlu2 %106  ;;  %v118_v52 = vmul.f32 %v209_v50, %v201_v36 }
 0x186   :  { %212 = vrcp.f32 %v107_v49  ;;  %v124_v56 = vpack.c.bf16 %v120_v51, %v120_v51 }
 0x187   :  { %v122_v58 = vpack.c.bf16 %v118_v52, %v118_v52 }
 0x188   :  { %v154_v61 = vunpack.c.l.b16 %v124_v56 }
 0x189   :  { %v128_v63 = vunpack.c.l.b16 %v122_v58 }
 0x18b   :  { %v211_v53 = vpop.eup %210 }
 0x18c   :  { %v213_v54 = vpop.eup %212  ;;  %v121_v55 = vmul.f32 %v211_v53, %v203_v39 }
 0x18d   :  { %v119_v57 = vmul.f32 %v213_v54, %v205_v40 }
 0x18e   :  { %v125_v59 = vpack.c.bf16 %v121_v55, %v121_v55 }
 0x18f   :  { %v123_v60 = vpack.c.bf16 %v119_v57, %v119_v57 }
 0x190   :  { %v155_v62 = vunpack.c.l.b16 %v125_v59 }
 0x191   :  { %v129_v0 = vunpack.c.l.b16 %v123_v60 }
 0x192   :  { %v156_v1 = vpack.c.b16 %v155_v62, %v154_v61 }
 0x193   :  { %v130_v2 = vpack.c.b16 %v129_v0, %v128_v63 }
 0x194   :  { %194 = vmatmul.msk.bf16.vlgmr.msra.gmra.mxu3 %vm77_vm4, %v156_v1 }
 0x195   :  { %193 = vmatmul.msk.bf16.vlgmr.msra.gmra.mxu2 %vm77_vm4, %v130_v2 }
 0x217   :  { %v172_v3 = vpop.f32.mrf.mxu3 }
 0x218   :  { %v147_v4 = vpop.f32.mrf.mxu2  ;;  %179 = vst [vmem:[%s283_s3 + $0x10] sm:$0xff] %v172_v3 }
 0x219   :  { %177 = vst [vmem:[%s283_s3] sm:$0xff] %v147_v4 }
 0x21f   :  { %v174_v5 = vpop.f32.mrf.mxu3 }
 0x220   :  { %v149_v6 = vpop.f32.mrf.mxu2  ;;  %180 = vst [vmem:[%s283_s3 + $0x18] sm:$0xff] %v174_v5 }
 0x221   :  { %178 = vst [vmem:[%s283_s3 + $0x8] sm:$0xff] %v149_v6 }

</bundles_post_ra>
